<compile_context>
chip_gen: v7x
topology: tpu7x:2x2x1
jax: 0.10.0
libtpu: 0.0.40
codegen_flags: <defaults>
</compile_context>

<pallas_src>
import functools
import math

import jax
import jax.numpy as jnp
from jax.experimental import pallas as pl
from jax.experimental.pallas import tpu as pltpu


# ------------------------------- helpers ---------------------------------------

def _tile(dim, desired, align):
    """Largest divisor of `dim` that is <= `desired` and a multiple of `align`.
    Falls back to the full dim (a full-extent block is always legal)."""
    hi = min(desired, dim)
    for cand in range(hi, align - 1, -1):
        if dim % cand == 0 and cand % align == 0:
            return cand
    return dim


def _vmem_limit_bytes():
    """~3/4 of physical VMEM for this generation (v5e/v6e 128MiB, v7x 64MiB)."""
    try:
        info = pltpu.get_tpu_info()
        cap = getattr(info, "vmem_capacity_bytes", None)
        if cap:
            return int(min(cap * 3 // 4, 96 * 1024 * 1024))
    except Exception:
        pass
    return 48 * 1024 * 1024


def _cparams(*dims):
    return pltpu.CompilerParams(dimension_semantics=dims,
                                vmem_limit_bytes=_vmem_limit_bytes())


# --------------------- fused per-head QKV projection ----------------------------

def _qkv_proj_kernel(x_ref, w_ref, q_ref, k_ref, v_ref, acc_ref, *, d_head):
    kk = pl.program_id(3)

    @pl.when(kk == 0)
    def _():
        acc_ref[...] = jnp.zeros_like(acc_ref)

    acc_ref[...] += jnp.dot(x_ref[...], w_ref[...],
                            preferred_element_type=jnp.float32)

    @pl.when(kk == pl.num_programs(3) - 1)
    def _():
        D = d_head
        q_ref[...] = acc_ref[:, 0:D].astype(q_ref.dtype)
        k_ref[...] = acc_ref[:, D:2 * D].astype(k_ref.dtype)
        v_ref[...] = acc_ref[:, 2 * D:3 * D].astype(v_ref.dtype)


def qkv_projection(x, w, *, num_head, d_head, tm=128, tk=512):
    """x:[B,T,dm] bf16, w:[H,dm,3D] bf16 -> (q, k, v) each [B,H,T,D] bf16.

    Writes the head-major layout directly from the matmul epilogue, so no
    [B,T,H*D] -> [B,H,T,D] transpose round-trip through HBM is needed."""
    B, T, dm = x.shape
    H, D = num_head, d_head
    tm = _tile(T, tm, 8)
    tk = _tile(dm, tk, 128)
    out = jax.ShapeDtypeStruct((B, H, T, D), jnp.bfloat16)
    o_spec = pl.BlockSpec((None, None, tm, D), lambda b, t, h, k: (b, h, t, 0))
    return pl.pallas_call(
        functools.partial(_qkv_proj_kernel, d_head=D),
        out_shape=(out, out, out),
        grid=(B, T // tm, H, dm // tk),
        in_specs=[pl.BlockSpec((None, tm, tk), lambda b, t, h, k: (b, t, k)),
                  pl.BlockSpec((None, tk, 3 * D), lambda b, t, h, k: (h, k, 0))],
        out_specs=(o_spec, o_spec, o_spec),
        scratch_shapes=[pltpu.VMEM((tm, 3 * D), jnp.float32)],
        compiler_params=_cparams("parallel", "parallel", "parallel", "arbitrary"),
    )(x, w)


# ----------------------- relative-embedding projection --------------------------

def _rel_proj_kernel(p_ref, w_ref, r_ref, acc_ref):
    kk = pl.program_id(2)

    @pl.when(kk == 0)
    def _():
        acc_ref[...] = jnp.zeros_like(acc_ref)

    acc_ref[...] += jnp.dot(p_ref[...], w_ref[...],
                            preferred_element_type=jnp.float32)

    @pl.when(kk == pl.num_programs(2) - 1)
    def _():
        r_ref[...] = acc_ref[...].astype(r_ref.dtype)


def rel_projection(pos_emb, w, *, num_head, d_head, tm=128, tk=512):
    """pos_emb:[T,dm] bf16, w:[H,dm,D] bf16 -> [H,T,D] bf16."""
    T, dm = pos_emb.shape
    H, D = num_head, d_head
    tm = _tile(T, tm, 8)
    tk = _tile(dm, tk, 128)
    return pl.pallas_call(
        _rel_proj_kernel,
        out_shape=jax.ShapeDtypeStruct((H, T, D), jnp.bfloat16),
        grid=(H, T // tm, dm // tk),
        in_specs=[pl.BlockSpec((tm, tk), lambda h, t, k: (t, k)),
                  pl.BlockSpec((None, tk, D), lambda h, t, k: (h, k, 0))],
        out_specs=pl.BlockSpec((None, tm, D), lambda h, t, k: (h, t, 0)),
        scratch_shapes=[pltpu.VMEM((tm, D), jnp.float32)],
        compiler_params=_cparams("parallel", "parallel", "arbitrary"),
    )(pos_emb, w)


# ----------------------- fused attention (grid = batch x head) ------------------

def _rel_shift(bd):
    """Exact Transformer-XL rel-shift of a [T,T] tile via ONE strided rotate.

      out[i, j] = bd[i, T-1-i+j]   (j <= i)
                = 0                (j == i+1)
                = bd[i+1, j-i-2]   (j >= i+2)

    Build c[i, :] = [0, bd[i+1, 0:T-1], bd[i, 0:T]]  (shape [T, 2T]) and rotate
    row i right by (i+1) (pltpu.roll == jnp.roll semantics, per-row shift
    `shift + i*stride`); the first T lanes of the rotated rows are the result.
    One XLU pass instead of the previous log2(T) concat+select passes.
    """
    T = bd.shape[0]
    up = jnp.concatenate([bd[1:, :], jnp.zeros((1, T), bd.dtype)], axis=0)
    c = jnp.concatenate(
        [jnp.zeros((T, 1), bd.dtype), up[:, :T - 1], bd], axis=1)     # [T, 2T]
    rolled = pltpu.roll(c, shift=1, axis=1, stride=1, stride_axis=0)
    return rolled[:, :T]


def _attention_kernel(*refs, scale_theta, has_mask):
    if has_mask:
        q_ref, k_ref, v_ref, r_ref, u_ref, w_ref, m_ref, o_ref = refs
    else:
        q_ref, k_ref, v_ref, r_ref, u_ref, w_ref, o_ref = refs
        m_ref = None

    T = q_ref.shape[0]

    # Fused score matmul:  (q+u)θ·kᵀ = θ(q·kᵀ) + θ(u·kᵀ)  (and same for v/r),
    # so one [T,D]@[D,2T] MXU pass + a tiny [2,D]@[D,2T] row-bias product.
    kr = jnp.concatenate([k_ref[...], r_ref[...]], axis=0)            # [2T, D] bf16
    qs = (q_ref[...].astype(jnp.float32) * scale_theta).astype(jnp.bfloat16)
    uv = jnp.concatenate([u_ref[...], w_ref[...]], axis=0)            # [2, D] f32
    uv = (uv * scale_theta).astype(jnp.bfloat16)

    dn = (((1,), (1,)), ((), ()))                                     # a @ b.T
    base = jax.lax.dot_general(qs, kr, dn,
                               preferred_element_type=jnp.float32)    # [T, 2T]
    bias = jax.lax.dot_general(uv, kr, dn,
                               preferred_element_type=jnp.float32)    # [2, 2T]

    ac = base[:, :T] + bias[0:1, :T]          # θ/√D · (q+u)·kᵀ
    bd = base[:, T:] + bias[1:2, T:]          # θ/√D · (q+v)·rᵀ
    s = ac + _rel_shift(bd)

    if has_mask:
        # Finite large-negative instead of -inf: fully-masked rows give a
        # uniform softmax rather than NaN (documented deviation from PyTorch).
        s = jnp.where(m_ref[...] != 0, -1e30, s)

    m = jnp.max(s, axis=-1, keepdims=True)
    p = jnp.exp(s - m)
    l = jnp.sum(p, axis=-1, keepdims=True)
    pv = jnp.dot(p.astype(jnp.bfloat16), v_ref[...],
                 preferred_element_type=jnp.float32)                  # [T, D]
    # approx reciprocal (EUP slot) is ~2^-12 relative error - negligible next
    # to the bf16 operands; swap to pv / l if downstream training is sensitive.
    o_ref[...] = (pv * pl.reciprocal(l, approx=True)).astype(o_ref.dtype)


def fused_attention(q, k, v, r, u_bias, v_bias, mask_i8, *, scale_theta):
    """q/k/v:[B,H,T,D] bf16, r:[H,T,D] bf16, biases:[H,1,D] f32 -> [B,H,T,D] bf16."""
    B, H, T, D = q.shape
    has_mask = mask_i8 is not None

    in_specs = [pl.BlockSpec((None, None, T, D), lambda b, h: (b, h, 0, 0)),
                pl.BlockSpec((None, None, T, D), lambda b, h: (b, h, 0, 0)),
                pl.BlockSpec((None, None, T, D), lambda b, h: (b, h, 0, 0)),
                pl.BlockSpec((None, T, D), lambda b, h: (h, 0, 0)),
                pl.BlockSpec((None, 1, D), lambda b, h: (h, 0, 0)),
                pl.BlockSpec((None, 1, D), lambda b, h: (h, 0, 0))]
    operands = [q, k, v, r, u_bias, v_bias]
    if has_mask:
        # Block index is independent of h -> fetched once per batch element.
        in_specs.append(pl.BlockSpec((None, T, T), lambda b, h: (b, 0, 0)))
        operands.append(mask_i8)

    kernel = functools.partial(_attention_kernel, scale_theta=scale_theta,
                               has_mask=has_mask)
    return pl.pallas_call(
        kernel,
        out_shape=jax.ShapeDtypeStruct((B, H, T, D), jnp.bfloat16),
        grid=(B, H),
        in_specs=in_specs,
        out_specs=pl.BlockSpec((None, None, T, D), lambda b, h: (b, h, 0, 0)),
        compiler_params=_cparams("parallel", "parallel"),
    )(*operands)


# ------------- output projection (heads = reduction) + residual + LayerNorm -----

def _out_proj_ln_kernel(a_ref, w_ref, x_ref, g_ref, b_ref, o_ref, acc_ref, *, eps):
    h = pl.program_id(2)

    @pl.when(h == 0)
    def _():
        acc_ref[...] = jnp.zeros_like(acc_ref)

    acc_ref[...] += jnp.dot(a_ref[...], w_ref[...],
                            preferred_element_type=jnp.float32)

    @pl.when(h == pl.num_programs(2) - 1)
    def _():
        y = acc_ref[...] + x_ref[...]
        mu = jnp.mean(y, axis=-1, keepdims=True)
        var = jnp.mean(jnp.square(y - mu), axis=-1, keepdims=True)
        yn = (y - mu) * jax.lax.rsqrt(var + eps)
        o_ref[...] = yn * g_ref[...] + b_ref[...]


def out_proj_ln(attn, w_o, resid, gamma, beta, *, tm=128, eps=1e-5):
    """attn:[B,H,T,D] bf16, w_o:[H,D,dm] bf16, resid:[B,T,dm] f32 -> [B,T,dm] f32.

    Heads are the innermost (reduction) grid axis, so the lane-dense per-head
    attention output is consumed directly - no [B,T,H*D] transpose needed."""
    B, H, T, D = attn.shape
    dm = w_o.shape[-1]
    tm = _tile(T, tm, 8)
    return pl.pallas_call(
        functools.partial(_out_proj_ln_kernel, eps=eps),
        out_shape=jax.ShapeDtypeStruct((B, T, dm), jnp.float32),
        grid=(B, T // tm, H),
        in_specs=[pl.BlockSpec((None, None, tm, D), lambda b, t, h: (b, h, t, 0)),
                  pl.BlockSpec((None, D, dm), lambda b, t, h: (h, 0, 0)),
                  pl.BlockSpec((None, tm, dm), lambda b, t, h: (b, t, 0)),
                  pl.BlockSpec((1, dm), lambda b, t, h: (0, 0)),
                  pl.BlockSpec((1, dm), lambda b, t, h: (0, 0))],
        out_specs=pl.BlockSpec((None, tm, dm), lambda b, t, h: (b, t, 0)),
        scratch_shapes=[pltpu.VMEM((tm, dm), jnp.float32)],
        compiler_params=_cparams("parallel", "parallel", "arbitrary"),
    )(attn, w_o, resid, gamma, beta)


# ------------------------------------ glue --------------------------------------

def prepare_params(raw, *, num_head, d_head):
    """Reorder + pre-transpose + pre-cast the projection weights (done once).

      w_qkv3 : [H, d_model, 3*D]  per-head [q|k|v] output columns
      w_r3   : [H, d_model, D]
      w_o3   : [H, D, d_model]    head becomes the out-proj reduction axis
    """
    H, D = num_head, d_head
    dm = raw["w_q"].shape[1]
    wq = raw["w_q"].reshape(H, D, dm)
    wk = raw["w_kv"][:H * D].reshape(H, D, dm)
    wv = raw["w_kv"][H * D:].reshape(H, D, dm)
    w_qkv3 = jnp.transpose(jnp.concatenate([wq, wk, wv], axis=1), (0, 2, 1))
    w_r3 = jnp.transpose(raw["w_r"].reshape(H, D, dm), (0, 2, 1))
    w_o3 = raw["w_o"].T.reshape(H, D, dm)
    return {
        "w_qkv3": w_qkv3.astype(jnp.bfloat16),
        "w_r3": w_r3.astype(jnp.bfloat16),
        "w_o3": w_o3.astype(jnp.bfloat16),
        "ln_g": raw["ln_g"].reshape(1, -1).astype(jnp.float32),
        "ln_b": raw["ln_b"].reshape(1, -1).astype(jnp.float32),
    }


def mhsa_forward(params, x, pos_emb, pos_bias_u, pos_bias_v, mask=None, theta=1.0):
    """Forward of LearnableMultiheadSelfAttention (memory=None, eval mode).

    x:[T,B,dm] f32, pos_emb:[T,dm], pos_bias_u/v:[H,D], mask:[T,T,B] bool."""
    T, B, dm = x.shape
    H, D = pos_bias_u.shape
    scale_theta = float(theta) / math.sqrt(D)

    xb = jnp.transpose(x, (1, 0, 2))                       # [B, T, dm] f32 residual
    xb16 = xb.astype(jnp.bfloat16)                         # bf16 A-stream

    q, k, v = qkv_projection(xb16, params["w_qkv3"], num_head=H, d_head=D)
    r = rel_projection(pos_emb.astype(jnp.bfloat16), params["w_r3"],
                       num_head=H, d_head=D)

    mask_i8 = None
    if mask is not None:                                   # [q, k, batch] -> [B, q, k]
        mask_i8 = jnp.transpose(mask, (2, 0, 1)).astype(jnp.int8)

    attn = fused_attention(q, k, v, r,
                           pos_bias_u.reshape(H, 1, D).astype(jnp.float32),
                           pos_bias_v.reshape(H, 1, D).astype(jnp.float32),
                           mask_i8, scale_theta=scale_theta)          # [B,H,T,D] bf16

    out = out_proj_ln(attn, params["w_o3"], xb, params["ln_g"], params["ln_b"])
    return jnp.transpose(out, (1, 0, 2))                   # back to [T, B, dm]


# ---------------------------- pure-JAX reference ---------------------------------

def reference_forward(raw, x, pos_emb, pos_bias_u, pos_bias_v, mask=None, theta=1.0):
    T, B, dm = x.shape
    H, D = pos_bias_u.shape
    scale = 1.0 / math.sqrt(D)
    c = x
    hq = (c @ raw["w_q"].T).reshape(T, B, H, D)
    hk, hv = jnp.split(c @ raw["w_kv"].T, 2, axis=-1)
    hk = hk.reshape(T, B, H, D)
    hv = hv.reshape(T, B, H, D)
    rel = (pos_emb @ raw["w_r"].T).reshape(T, H, D)
    hqu = hq + pos_bias_u
    hqv = hq + pos_bias_v
    AC = jnp.einsum('ibnd,jbnd->ijbn', hqu, hk)
    BD = jnp.einsum('ibnd,jnd->ijbn', hqv, rel)
    I, J = BD.shape[0], BD.shape[1]
    zp = jnp.zeros((I, 1, B, H), BD.dtype)
    BDp = jnp.concatenate([zp, BD], axis=1).reshape(J + 1, I, B, H)
    BD = BDp[1:].reshape(I, J, B, H)
    score = (AC + BD) * scale * theta
    if mask is not None:
        score = jnp.where(mask[:, :, :, None], -jnp.inf, score)
    prob = jax.nn.softmax(score, axis=1)
    vec = jnp.einsum('ijbn,jbnd->ibnd', prob, hv).reshape(T, B, H * D)
    y = x + vec @ raw["w_o"].T
    mu = y.mean(-1, keepdims=True)
    var = ((y - mu) ** 2).mean(-1, keepdims=True)
    return (y - mu) / jnp.sqrt(var + 1e-5) * raw["ln_g"] + raw["ln_b"]


# ------------------------------------ main ---------------------------------------

if __name__ == "__main__":
    # Moderate but hardware-realistic layout: T and d_model (8,128)-aligned,
    # d_head=64 - exercises the rel-shift roll, mask, and head-grid paths.
    T, B, dm, H, D = 128, 2, 256, 4, 64
    key = jax.random.PRNGKey(0)
    ks = jax.random.split(key, 8)
    raw = {
        "w_q":  0.05 * jax.random.normal(ks[0], (H * D, dm), jnp.float32),
        "w_kv": 0.05 * jax.random.normal(ks[1], (2 * H * D, dm), jnp.float32),
        "w_r":  0.05 * jax.random.normal(ks[2], (H * D, dm), jnp.float32),
        "w_o":  0.05 * jax.random.normal(ks[3], (dm, H * D), jnp.float32),
        "ln_g": jnp.ones((dm,), jnp.float32),
        "ln_b": jnp.zeros((dm,), jnp.float32),
    }
    x = jax.random.normal(ks[4], (T, B, dm), jnp.float32)
    pos_emb = jax.random.normal(ks[5], (T, dm), jnp.float32)
    pos_bias_u = 0.05 * jax.random.normal(ks[6], (H, D), jnp.float32)
    pos_bias_v = 0.05 * jax.random.normal(ks[7], (H, D), jnp.float32)

    params = prepare_params(raw, num_head=H, d_head=D)

    # ---- unmasked path (mask=None, matches module default) ----
    out = jax.block_until_ready(
        mhsa_forward(params, x, pos_emb, pos_bias_u, pos_bias_v))
    ref = reference_forward(raw, x, pos_emb, pos_bias_u, pos_bias_v)
    assert out.shape == (T, B, dm)
    err = float(jnp.max(jnp.abs(out - ref)))
    assert err < 3e-2, f"unmasked max abs error {err}"

    # ---- masked (causal) path ----
    causal = jnp.arange(T)[None, :] > jnp.arange(T)[:, None]          # [q, k]
    mask = jnp.broadcast_to(causal[:, :, None], (T, T, B))            # [q, k, batch]
    out_m = jax.block_until_ready(
        mhsa_forward(params, x, pos_emb, pos_bias_u, pos_bias_v, mask=mask))
    ref_m = reference_forward(raw, x, pos_emb, pos_bias_u, pos_bias_v, mask=mask)
    err_m = float(jnp.max(jnp.abs(out_m - ref_m)))
    assert err_m < 3e-2, f"masked max abs error {err_m}"

    print("KERNEL_OK")
</pallas_src>

<mosaic_0001>
module attributes {stable_mosaic.version = 11 : i64} {
  func.func @_qkv_proj_kernel(%arg0: i32, %arg1: i32, %arg2: i32, %arg3: i32, %arg4: memref<1x128x256xbf16, #tpu.memory_space<vmem>>, %arg5: memref<1x256x192xbf16, #tpu.memory_space<vmem>>, %arg6: memref<1x1x128x64xbf16, #tpu.memory_space<vmem>>, %arg7: memref<1x1x128x64xbf16, #tpu.memory_space<vmem>>, %arg8: memref<1x1x128x64xbf16, #tpu.memory_space<vmem>>, %arg9: memref<128x192xf32, #tpu.memory_space<vmem>>) attributes {dimension_semantics = [#tpu.dimension_semantics<parallel>, #tpu.dimension_semantics<parallel>, #tpu.dimension_semantics<parallel>, #tpu.dimension_semantics<arbitrary>], iteration_bounds = array<i64: 2, 1, 4, 1>, scalar_prefetch = 0 : i64, scratch_operands = 1 : i64, tpu.core_type = #tpu.core_type<tc>, window_params = [{transform_indices = @transform_0, window_bounds = array<i64: 1, 128, 256>}, {transform_indices = @transform_1, window_bounds = array<i64: 1, 256, 192>}, {transform_indices = @transform_2, window_bounds = array<i64: 1, 1, 128, 64>}, {transform_indices = @transform_3, window_bounds = array<i64: 1, 1, 128, 64>}, {transform_indices = @transform_4, window_bounds = array<i64: 1, 1, 128, 64>}]} {
    %c0_i32 = arith.constant 0 : i32
    %0 = arith.cmpi eq, %arg3, %c0_i32 : i32
    %1 = arith.extui %0 : i1 to i32
    %c0_i32_0 = arith.constant 0 : i32
    %2 = arith.cmpi ne, %1, %c0_i32_0 : i32
    scf.if %2 {
      %cst_12 = arith.constant 0.000000e+00 : f32
      %14 = vector.broadcast %cst_12 : f32 to vector<128x192xf32>
      %c0_13 = arith.constant 0 : index
      %c0_14 = arith.constant 0 : index
      %15 = vector.load %arg9[%c0_13, %c0_14] : memref<128x192xf32, #tpu.memory_space<vmem>>, vector<128x192xf32>
      tpu.vector_store %arg9[%c0_13, %c0_14], %14 {strides = array<i32>} : memref<128x192xf32, #tpu.memory_space<vmem>>, vector<128x192xf32>,
    } else {
    }
    %c0 = arith.constant 0 : index
    %c0_1 = arith.constant 0 : index
    %3 = vector.load %arg9[%c0, %c0_1] : memref<128x192xf32, #tpu.memory_space<vmem>>, vector<128x192xf32>
    %c0_2 = arith.constant 0 : index
    %c0_3 = arith.constant 0 : index
    %c0_4 = arith.constant 0 : index
    %4 = vector.load %arg4[%c0_2, %c0_3, %c0_4] : memref<1x128x256xbf16, #tpu.memory_space<vmem>>, vector<1x128x256xbf16>
    %5 = vector.shape_cast %4 : vector<1x128x256xbf16> to vector<128x256xbf16>
    %c0_5 = arith.constant 0 : index
    %c0_6 = arith.constant 0 : index
    %c0_7 = arith.constant 0 : index
    %6 = vector.load %arg5[%c0_5, %c0_6, %c0_7] : memref<1x256x192xbf16, #tpu.memory_space<vmem>>, vector<1x256x192xbf16>
    %7 = vector.shape_cast %6 : vector<1x256x192xbf16> to vector<256x192xbf16>
    %cst = arith.constant dense<0.000000e+00> : vector<128x192xf32>
    %8 = tpu.matmul %5, %7, %cst {dimension_numbers = #tpu.dot_dimension_numbers<[1], [0], [0], [1], [0, 0, 1, 1], [], []>} : vector<128x256xbf16>, vector<256x192xbf16>, vector<128x192xf32> -> vector<128x192xf32>
    %9 = arith.addf %3, %8 : vector<128x192xf32>
    %c0_8 = arith.constant 0 : index
    %c0_9 = arith.constant 0 : index
    %10 = vector.load %arg9[%c0_8, %c0_9] : memref<128x192xf32, #tpu.memory_space<vmem>>, vector<128x192xf32>
    tpu.vector_store %arg9[%c0_8, %c0_9], %9 {strides = array<i32>} : memref<128x192xf32, #tpu.memory_space<vmem>>, vector<128x192xf32>,
    %c0_i32_10 = arith.constant 0 : i32
    %11 = arith.cmpi eq, %arg3, %c0_i32_10 : i32
    %12 = arith.extui %11 : i1 to i32
    %c0_i32_11 = arith.constant 0 : i32
    %13 = arith.cmpi ne, %12, %c0_i32_11 : i32
    scf.if %13 {
      %c0_12 = arith.constant 0 : index
      %c0_13 = arith.constant 0 : index
      %14 = vector.load %arg9[%c0_12, %c0_13] : memref<128x192xf32, #tpu.memory_space<vmem>>, vector<128x64xf32>
      %15 = arith.truncf %14 : vector<128x64xf32> to vector<128x64xbf16>
      %c0_14 = arith.constant 0 : index
      %c0_15 = arith.constant 0 : index
      %c0_16 = arith.constant 0 : index
      %c0_17 = arith.constant 0 : index
      %16 = vector.load %arg6[%c0_14, %c0_15, %c0_16, %c0_17] : memref<1x1x128x64xbf16, #tpu.memory_space<vmem>>, vector<1x1x128x64xbf16>
      %17 = vector.shape_cast %16 : vector<1x1x128x64xbf16> to vector<128x64xbf16>
      %18 = vector.shape_cast %15 : vector<128x64xbf16> to vector<1x1x128x64xbf16>
      tpu.vector_store %arg6[%c0_14, %c0_15, %c0_16, %c0_17], %18 {strides = array<i32>} : memref<1x1x128x64xbf16, #tpu.memory_space<vmem>>, vector<1x1x128x64xbf16>,
      %c0_18 = arith.constant 0 : index
      %c64 = arith.constant 64 : index
      %19 = vector.load %arg9[%c0_18, %c64] : memref<128x192xf32, #tpu.memory_space<vmem>>, vector<128x64xf32>
      %20 = arith.truncf %19 : vector<128x64xf32> to vector<128x64xbf16>
      %c0_19 = arith.constant 0 : index
      %c0_20 = arith.constant 0 : index
      %c0_21 = arith.constant 0 : index
      %c0_22 = arith.constant 0 : index
      %21 = vector.load %arg7[%c0_19, %c0_20, %c0_21, %c0_22] : memref<1x1x128x64xbf16, #tpu.memory_space<vmem>>, vector<1x1x128x64xbf16>
      %22 = vector.shape_cast %21 : vector<1x1x128x64xbf16> to vector<128x64xbf16>
      %23 = vector.shape_cast %20 : vector<128x64xbf16> to vector<1x1x128x64xbf16>
      tpu.vector_store %arg7[%c0_19, %c0_20, %c0_21, %c0_22], %23 {strides = array<i32>} : memref<1x1x128x64xbf16, #tpu.memory_space<vmem>>, vector<1x1x128x64xbf16>,
      %c0_23 = arith.constant 0 : index
      %c128 = arith.constant 128 : index
      %24 = vector.load %arg9[%c0_23, %c128] : memref<128x192xf32, #tpu.memory_space<vmem>>, vector<128x64xf32>
      %25 = arith.truncf %24 : vector<128x64xf32> to vector<128x64xbf16>
      %c0_24 = arith.constant 0 : index
      %c0_25 = arith.constant 0 : index
      %c0_26 = arith.constant 0 : index
      %c0_27 = arith.constant 0 : index
      %26 = vector.load %arg8[%c0_24, %c0_25, %c0_26, %c0_27] : memref<1x1x128x64xbf16, #tpu.memory_space<vmem>>, vector<1x1x128x64xbf16>
      %27 = vector.shape_cast %26 : vector<1x1x128x64xbf16> to vector<128x64xbf16>
      %28 = vector.shape_cast %25 : vector<128x64xbf16> to vector<1x1x128x64xbf16>
      tpu.vector_store %arg8[%c0_24, %c0_25, %c0_26, %c0_27], %28 {strides = array<i32>} : memref<1x1x128x64xbf16, #tpu.memory_space<vmem>>, vector<1x1x128x64xbf16>,
    } else {
    }
    return
  }
  func.func @transform_0(%arg0: i32, %arg1: i32, %arg2: i32, %arg3: i32) -> (i32, i32, i32) {
    %c0_i32 = arith.constant 0 : i32
    return %arg0, %arg1, %arg3 : i32, i32, i32
  }
  func.func @transform_1(%arg0: i32, %arg1: i32, %arg2: i32, %arg3: i32) -> (i32, i32, i32) {
    %c0_i32 = arith.constant 0 : i32
    %c0_i32_0 = arith.constant 0 : i32
    return %arg2, %arg3, %c0_i32 : i32, i32, i32
  }
  func.func @transform_2(%arg0: i32, %arg1: i32, %arg2: i32, %arg3: i32) -> (i32, i32, i32, i32) {
    %c0_i32 = arith.constant 0 : i32
    %c0_i32_0 = arith.constant 0 : i32
    return %arg0, %arg2, %arg1, %c0_i32 : i32, i32, i32, i32
  }
  func.func @transform_3(%arg0: i32, %arg1: i32, %arg2: i32, %arg3: i32) -> (i32, i32, i32, i32) {
    %c0_i32 = arith.constant 0 : i32
    %c0_i32_0 = arith.constant 0 : i32
    return %arg0, %arg2, %arg1, %c0_i32 : i32, i32, i32, i32
  }
  func.func @transform_4(%arg0: i32, %arg1: i32, %arg2: i32, %arg3: i32) -> (i32, i32, i32, i32) {
    %c0_i32 = arith.constant 0 : i32
    %c0_i32_0 = arith.constant 0 : i32
    return %arg0, %arg2, %arg1, %c0_i32 : i32, i32, i32, i32
  }
}

</mosaic_0001>

<bundles_post_ra>
// kernel: tpu_custom_call.1
= control target key start
LH: loop header
LB: loop body
LE: loop exit
PB: predicated region body
PF: predicated region fallthrough
CT: control target
= control target key end

     0   :  { %s1895_s15 = smov 0   ;;  %s1897_s16 = smov 0   ;;  %s2169_s0 = inlined_call_operand.vmem [shape: bf16[2,128,256], index: 0, kind: input, shape index: {}]   ;;  %s2170_s1 = inlined_call_operand.vmem [shape: bf16[4,256,192], index: 1, kind: input, shape index: {}]   ;;  %s2171_s2 = inlined_call_operand.vmem [shape: bf16[2,4,128,64], index: 2, kind: output, shape index: {0}]   ;;  %s2172_s3 = inlined_call_operand.vmem [shape: bf16[2,4,128,64], index: 3, kind: output, shape index: {1}]   ;;  %s2173_s4 = inlined_call_operand.vmem [shape: bf16[2,4,128,64], index: 4, kind: output, shape index: {2}]  }
   0x1   :  { %s1899_s17 = smov 0   ;;  %s1901_s18 = smov 0  }
   0x2   :  { %s1903_s19 = smov 0  }
   0x3 LB: > { %s33_s20 = sadd.s32 1, %s1858_s17  ;;  %s41_s21 = sadd.s32 1, %s1862_s18  ;;  %s1866_s19 = sphi %s1903_s19, %s15_s19   ;;  %s1862_s18 = sphi %s1901_s18, %s2177_s18   ;;  %s1858_s17 = sphi %s1899_s17, %s2176_s17   ;;  %s1854_s16 = sphi %s1897_s16, %s2175_s16   ;;  %s1850_s15 = sphi %s1895_s15, %s2174_s15  }
   0x4   : > { %p35_p0 = scmp.ge.s32.totalorder %s33_s20, 4  ;;  %p1520_p1 = scmp.ge.s32.totalorder %s1866_s19, 1 }
   0x5   : > { %p238_p2 = scmp.lt.s32.totalorder %s1866_s19, 9 }
   0x6   : > { %s2179_s20 = smov (%p35_p0, %s33_s20), 0  ;;  %s2181_s21 = smov (!%p35_p0, %s41_s21), %s1862_s18 }
   0x7   : > { %p239_p3 = pnand %p1520_p1, %p238_p2  ;;  %p43_p4 = scmp.ge.s32.totalorder %s2181_s21, 2 }
   0x8   : > { %p334_p5 = scmp.lt.s32.totalorder (!%p239_p3), %s1850_s15, 3  ;;  %p319_p6 = scmp.lt.s32.totalorder (!%p239_p3), %s1854_s16, 1  ;;  %vm391_vm0 = vcmask (!%p239_p3), 523264   ;;  %v1868_v48 = vmov (!%p239_p3), 0.0   ;;  %vm1004_vm1 = vcmask (!%p239_p3), 519168  }
   0x9   : > { %s2183_s21 = smov (%p43_p4, %s2181_s21), 0  ;;  %242 = sbr.rel (%p239_p3) target bundleno = 446 (0x1be), region = 28 }
   0xa   : > { %392 = vst.msk [vmem:[#allocation2 + $0x8] sm:$0xff] (!%p239_p3), %vm391_vm0, %v1868_v48  ;;  %394 = vst.msk [vmem:[#allocation2 + $0x18] sm:$0xff] (!%p239_p3), %vm391_vm0, %v1868_v48  ;;  %s1869_s11 = smov (!%p239_p3), 64  }
   0xb   : > { %396 = vst.msk [vmem:[#allocation2 + $0x28] sm:$0xff] (!%p239_p3), %vm391_vm0, %v1868_v48  ;;  %398 = vst.msk [vmem:[#allocation2 + $0x38] sm:$0xff] (!%p239_p3), %vm391_vm0, %v1868_v48 }
   0xc   : > { %400 = vst.msk [vmem:[#allocation2 + $0x48] sm:$0xff] (!%p239_p3), %vm391_vm0, %v1868_v48  ;;  %402 = vst.msk [vmem:[#allocation2 + $0x58] sm:$0xff] (!%p239_p3), %vm391_vm0, %v1868_v48 }
   0xd   : > { %404 = vst.msk [vmem:[#allocation2 + $0x68] sm:$0xff] (!%p239_p3), %vm391_vm0, %v1868_v48  ;;  %406 = vst.msk [vmem:[#allocation2 + $0x78] sm:$0xff] (!%p239_p3), %vm391_vm0, %v1868_v48 }
   0xe   : > { %408 = vst.msk [vmem:[#allocation2 + $0x88] sm:$0xff] (!%p239_p3), %vm391_vm0, %v1868_v48  ;;  %410 = vst.msk [vmem:[#allocation2 + $0x98] sm:$0xff] (!%p239_p3), %vm391_vm0, %v1868_v48 }
   0xf   : > { %412 = vst.msk [vmem:[#allocation2 + $0xa8] sm:$0xff] (!%p239_p3), %vm391_vm0, %v1868_v48  ;;  %414 = vst.msk [vmem:[#allocation2 + $0xb8] sm:$0xff] (!%p239_p3), %vm391_vm0, %v1868_v48 }
  0x10   : > { %s2185_s15 = smov (!%p334_p5, %s1850_s15), 3  ;;  %s2187_s16 = smov (!%p319_p6, %s1854_s16), 1  ;;  %416 = vst.msk [vmem:[#allocation2 + $0xc8] sm:$0xff] %vm391_vm0, %v1868_v48  ;;  %418 = vst.msk [vmem:[#allocation2 + $0xd8] sm:$0xff] %vm391_vm0, %v1868_v48 }
  0x11   : > { %s1633_s22 = sshll.u32 %s2185_s15, 8  ;;  %s1525_s23 = sshll.u32 %s2185_s15, 4  ;;  %420 = vst.msk [vmem:[#allocation2 + $0xe8] sm:$0xff] %vm391_vm0, %v1868_v48  ;;  %422 = vst.msk [vmem:[#allocation2 + $0xf8] sm:$0xff] %vm391_vm0, %v1868_v48  ;;  %v424_v49 = vld [vmem:[#allocation2 + $0x8] sm:$0xff]  ;;  %v426_v55 = vld [vmem:[#allocation2 + $0x18] sm:$0xff] }
  0x12   : > { %s1930_s26 = scalar_lea.vmem %s2170_s1, %s1633_s22  ;;  %s1526_s27 = sshll.u32 %s2187_s16, 6 }
  0x13   : > { %v1756_v0 = vld [vmem:[%s1930_s26 + $0x4] ss:$8 sps:$4 sm:$0xff]   ;;  %v1758_v1 = vld [vmem:[%s1930_s26] ss:$8 sps:$4 sm:$0xff]   ;;  %s1935_s28 = sadd.s32 %s1526_s27, %s1525_s23  ;;  %v1759_v2 = vld [vmem:[%s1930_s26 + $0x14] ss:$8 sps:$4 sm:$0xff]  }
  0x14   : > { %743 = vmatprep.subr.bf16.mxu0 %v1756_v0  ;;  %1682 = vmatprep.subr.bf16.mxu1 %v1756_v0  ;;  %v1761_v3 = vld [vmem:[%s1930_s26 + $0x10] ss:$8 sps:$4 sm:$0xff]   ;;  %v1762_v4 = vld [vmem:[%s1930_s26 + $0x24] ss:$8 sps:$4 sm:$0xff]   ;;  %v1764_v5 = vld [vmem:[%s1930_s26 + $0x20] ss:$8 sps:$4 sm:$0xff]  }
  0x15   : > { %744 = vmatpush1.bf16.msra.mxu0 %v1758_v1  ;;  %1698 = vmatpush1.bf16.msra.mxu1 %v1758_v1  ;;  %v1765_v6 = vld [vmem:[%s1930_s26 + $0x34] ss:$8 sps:$4 sm:$0xff]   ;;  %v1767_v7 = vld [vmem:[%s1930_s26 + $0x30] ss:$8 sps:$4 sm:$0xff]   ;;  %v1768_v8 = vld [vmem:[%s1930_s26 + $0x44] ss:$8 sps:$4 sm:$0xff]  }
  0x16   : > { %745 = vmatprep.subr.bf16.mxu0 %v1759_v2  ;;  %1683 = vmatprep.subr.bf16.mxu1 %v1759_v2  ;;  %v1770_v9 = vld [vmem:[%s1930_s26 + $0x40] ss:$8 sps:$4 sm:$0xff]   ;;  %v1771_v10 = vld [vmem:[%s1930_s26 + $0x54] ss:$8 sps:$4 sm:$0xff]   ;;  %s1632_s29 = sshll.u32 %s2187_s16, 7  ;;  %s2006_s7 = sshll.u32 %s1935_s28, 2 }
  0x17   : > { %v1773_v11 = vld [vmem:[%s1930_s26 + $0x50] ss:$8 sps:$4 sm:$0xff]   ;;  %s1951_s6 = scalar_lea.vmem %s2169_s0, %s1632_s29  ;;  %v1774_v12 = vld [vmem:[%s1930_s26 + $0x64] ss:$8 sps:$4 sm:$0xff]   ;;  %v1776_v14 = vld [vmem:[%s1930_s26 + $0x60] ss:$8 sps:$4 sm:$0xff]   ;;  %s2012_s10 = scalar_lea.vmem %s2171_s2, %s2006_s7 }
  0x18   : > { %v1806_v13 = vld [vmem:[%s1951_s6 + $0x4] ss:$8 sps:$4 sm:$0xff]   ;;  %v1777_v16 = vld [vmem:[%s1930_s26 + $0x74] ss:$8 sps:$4 sm:$0xff]   ;;  %v1779_v17 = vld [vmem:[%s1930_s26 + $0x70] ss:$8 sps:$4 sm:$0xff]   ;;  %s2033_s14 = scalar_lea.vmem %s2173_s4, %s2006_s7  ;;  %s2120_s22 = scalar_lea.vmem %s2172_s3, %s2006_s7 }
  0x19   : > { %746 = vmatpush1.bf16.msra.mxu0 %v1761_v3  ;;  %1699 = vmatpush1.bf16.msra.mxu1 %v1761_v3  ;;  %v1809_v15 = vld [vmem:[%s1951_s6 + $0x44] ss:$8 sps:$4 sm:$0xff]   ;;  %v1782_v19 = vld [vmem:[%s1930_s26 + $0x80] ss:$8 sps:$4 sm:$0xff]   ;;  %v1783_v20 = vld [vmem:[%s1930_s26 + $0x94] ss:$8 sps:$4 sm:$0xff]  }
  0x1a   : > { %747 = vmatprep.subr.bf16.mxu0 %v1762_v4  ;;  %1684 = vmatprep.subr.bf16.mxu1 %v1762_v4  ;;  %v1780_v18 = vld [vmem:[%s1930_s26 + $0x84] ss:$8 sps:$4 sm:$0xff]   ;;  %v1785_v21 = vld [vmem:[%s1930_s26 + $0x90] ss:$8 sps:$4 sm:$0xff]   ;;  %v1788_v23 = vld [vmem:[%s1930_s26 + $0xa0] ss:$8 sps:$4 sm:$0xff]  }
  0x1b   : > { %775 = vmatprep.mubr.bf16.mxu0 %v1806_v13  ;;  %815 = vmatprep.mubr.bf16.mxu1 %v1809_v15  ;;  %v1786_v22 = vld [vmem:[%s1930_s26 + $0xa4] ss:$8 sps:$4 sm:$0xff]   ;;  %v1789_v24 = vld [vmem:[%s1930_s26 + $0xb4] ss:$8 sps:$4 sm:$0xff]   ;;  %v1791_v25 = vld [vmem:[%s1930_s26 + $0xb0] ss:$8 sps:$4 sm:$0xff]  }
  0x1c   : > { %v1792_v26 = vld [vmem:[%s1930_s26 + $0xc4] ss:$8 sps:$4 sm:$0xff]   ;;  %v1794_v27 = vld [vmem:[%s1930_s26 + $0xc0] ss:$8 sps:$4 sm:$0xff]   ;;  %v1795_v28 = vld [vmem:[%s1930_s26 + $0xd4] ss:$8 sps:$4 sm:$0xff]  }
  0x1d   : > { %748 = vmatpush1.bf16.msra.mxu0 %v1764_v5  ;;  %1700 = vmatpush1.bf16.msra.mxu1 %v1764_v5  ;;  %v1797_v29 = vld [vmem:[%s1930_s26 + $0xd0] ss:$8 sps:$4 sm:$0xff]   ;;  %v1798_v30 = vld [vmem:[%s1930_s26 + $0xe4] ss:$8 sps:$4 sm:$0xff]   ;;  %v1800_v31 = vld [vmem:[%s1930_s26 + $0xe0] ss:$8 sps:$4 sm:$0xff]  }
  0x1e   : > { %749 = vmatprep.subr.bf16.mxu0 %v1765_v6  ;;  %1685 = vmatprep.subr.bf16.mxu1 %v1765_v6  ;;  %v1801_v32 = vld [vmem:[%s1930_s26 + $0xf4] ss:$8 sps:$4 sm:$0xff]   ;;  %v1803_v33 = vld [vmem:[%s1930_s26 + $0xf0] ss:$8 sps:$4 sm:$0xff]   ;;  %v1804_v34 = vld [vmem:[%s1951_s6] ss:$8 sps:$4 sm:$0xff]  }
  0x1f   : > { %v1807_v35 = vld [vmem:[%s1951_s6 + $0x40] ss:$8 sps:$4 sm:$0xff]   ;;  %v1810_v36 = vld [vmem:[%s1951_s6 + $0x14] ss:$8 sps:$4 sm:$0xff]   ;;  %v1812_v38 = vld [vmem:[%s1951_s6 + $0x10] ss:$8 sps:$4 sm:$0xff]  }
  0x20   : > { %v1813_v37 = vld [vmem:[%s1951_s6 + $0x54] ss:$8 sps:$4 sm:$0xff]   ;;  %v1815_v39 = vld [vmem:[%s1951_s6 + $0x50] ss:$8 sps:$4 sm:$0xff]   ;;  %v1816_v40 = vld [vmem:[%s1951_s6 + $0x24] ss:$8 sps:$4 sm:$0xff]  }
  0x21   : > { %750 = vmatpush1.bf16.msra.mxu0 %v1767_v7  ;;  %1701 = vmatpush1.bf16.msra.mxu1 %v1767_v7  ;;  %v1819_v41 = vld [vmem:[%s1951_s6 + $0x64] ss:$8 sps:$4 sm:$0xff]   ;;  %v1818_v42 = vld [vmem:[%s1951_s6 + $0x20] ss:$8 sps:$4 sm:$0xff]   ;;  %v1822_v44 = vld [vmem:[%s1951_s6 + $0x34] ss:$8 sps:$4 sm:$0xff]  }
  0x22   : > { %751 = vmatprep.subr.bf16.mxu0 %v1768_v8  ;;  %1686 = vmatprep.subr.bf16.mxu1 %v1768_v8  ;;  %v1821_v43 = vld [vmem:[%s1951_s6 + $0x60] ss:$8 sps:$4 sm:$0xff]   ;;  %v1825_v45 = vld [vmem:[%s1951_s6 + $0x74] ss:$8 sps:$4 sm:$0xff]   ;;  %v1824_v46 = vld [vmem:[%s1951_s6 + $0x30] ss:$8 sps:$4 sm:$0xff]  }
  0x23   : > { %v1827_v47 = vld [vmem:[%s1951_s6 + $0x70] ss:$8 sps:$4 sm:$0xff]   ;;  %v440_v50 = vld [vmem:[#allocation2 + $0x88] sm:$0xff] }
  0x24   : > { %v442_v56 = vld [vmem:[#allocation2 + $0x98] sm:$0xff]  ;;  %v428_v5 = vld [vmem:[#allocation2 + $0x28] sm:$0xff] }
  0x25   : > { %752 = vmatpush1.bf16.msra.mxu0 %v1770_v9  ;;  %1702 = vmatpush1.bf16.msra.mxu1 %v1770_v9  ;;  %v444_v6 = vld [vmem:[#allocation2 + $0xa8] sm:$0xff] }
  0x26   : > { %753 = vmatprep.subr.bf16.mxu0 %v1771_v10  ;;  %1687 = vmatprep.subr.bf16.mxu1 %v1771_v10  ;;  %v430_v10 = vld [vmem:[#allocation2 + $0x38] sm:$0xff] }
  0x29   : > { %754 = vmatpush1.bf16.msra.mxu0 %v1773_v11  ;;  %1703 = vmatpush1.bf16.msra.mxu1 %v1773_v11 }
  0x2a   : > { %755 = vmatprep.subr.bf16.mxu0 %v1774_v12  ;;  %1688 = vmatprep.subr.bf16.mxu1 %v1774_v12  ;;  %v446_v12 = vld [vmem:[#allocation2 + $0xb8] sm:$0xff] }
  0x2d   : > { %756 = vmatpush1.bf16.msra.mxu0 %v1776_v14  ;;  %1704 = vmatpush1.bf16.msra.mxu1 %v1776_v14 }
  0x2e   : > { %757 = vmatprep.subr.bf16.mxu0 %v1777_v16  ;;  %1689 = vmatprep.subr.bf16.mxu1 %v1777_v16 }
  0x31   : > { %758 = vmatpush1.bf16.msra.mxu0 %v1779_v17  ;;  %1705 = vmatpush1.bf16.msra.mxu1 %v1779_v17 }
  0x32   : > { %759 = vmatprep.subr.bf16.mxu0 %v1780_v18  ;;  %1690 = vmatprep.subr.bf16.mxu1 %v1780_v18 }
  0x35   : > { %760 = vmatpush1.bf16.msra.mxu0 %v1782_v19  ;;  %1706 = vmatpush1.bf16.msra.mxu1 %v1782_v19 }
  0x36   : > { %761 = vmatprep.subr.bf16.mxu0 %v1783_v20  ;;  %1691 = vmatprep.subr.bf16.mxu1 %v1783_v20 }
  0x39   : > { %762 = vmatpush1.bf16.msra.mxu0 %v1785_v21  ;;  %1707 = vmatpush1.bf16.msra.mxu1 %v1785_v21 }
  0x3a   : > { %763 = vmatprep.subr.bf16.mxu0 %v1786_v22  ;;  %1692 = vmatprep.subr.bf16.mxu1 %v1786_v22 }
  0x3d   : > { %764 = vmatpush1.bf16.msra.mxu0 %v1788_v23  ;;  %1708 = vmatpush1.bf16.msra.mxu1 %v1788_v23 }
  0x3e   : > { %765 = vmatprep.subr.bf16.mxu0 %v1789_v24  ;;  %1693 = vmatprep.subr.bf16.mxu1 %v1789_v24 }
  0x41   : > { %766 = vmatpush1.bf16.msra.mxu0 %v1791_v25  ;;  %1709 = vmatpush1.bf16.msra.mxu1 %v1791_v25 }
  0x42   : > { %767 = vmatprep.subr.bf16.mxu0 %v1792_v26  ;;  %1694 = vmatprep.subr.bf16.mxu1 %v1792_v26 }
  0x45   : > { %768 = vmatpush1.bf16.msra.mxu0 %v1794_v27  ;;  %1710 = vmatpush1.bf16.msra.mxu1 %v1794_v27 }
  0x46   : > { %769 = vmatprep.subr.bf16.mxu0 %v1795_v28  ;;  %1695 = vmatprep.subr.bf16.mxu1 %v1795_v28 }
  0x49   : > { %770 = vmatpush1.bf16.msra.mxu0 %v1797_v29  ;;  %1711 = vmatpush1.bf16.msra.mxu1 %v1797_v29 }
  0x4a   : > { %771 = vmatprep.subr.bf16.mxu0 %v1798_v30  ;;  %1696 = vmatprep.subr.bf16.mxu1 %v1798_v30 }
  0x4d   : > { %772 = vmatpush1.bf16.msra.mxu0 %v1800_v31  ;;  %1712 = vmatpush1.bf16.msra.mxu1 %v1800_v31 }
  0x4e   : > { %773 = vmatprep.subr.bf16.mxu0 %v1801_v32  ;;  %1697 = vmatprep.subr.bf16.mxu1 %v1801_v32 }
  0x51   : > { %774 = vmatpush1.bf16.msra.mxu0 %v1803_v33  ;;  %1713 = vmatpush1.bf16.msra.mxu1 %v1803_v33  ;;  %v432_v33 = vld [vmem:[#allocation2 + $0x48] sm:$0xff] }
  0x54   : > { %776 = vmatmul.mubr.bf16.vlgmr.msra.gmra.mrb[0].mxu0 %v1804_v34  ;;  %816 = vmatmul.mubr.bf16.vlgmr.msra.gmra.mrb[0].mxu1 %v1807_v35  ;;  %v448_v34 = vld [vmem:[#allocation2 + $0xc8] sm:$0xff] }
  0x55   : > { %785 = vmatprep.mubr.bf16.mxu0 %v1810_v36  ;;  %825 = vmatprep.mubr.bf16.mxu1 %v1813_v37 }
  0x5c   : > { %786 = vmatmul.mubr.bf16.gmra.mrb[4].mxu0 %v1812_v38  ;;  %826 = vmatmul.mubr.bf16.gmra.mrb[4].mxu1 %v1815_v39  ;;  %v434_v38 = vld [vmem:[#allocation2 + $0x58] sm:$0xff] }
  0x5d   : > { %795 = vmatprep.mubr.bf16.mxu0 %v1816_v40  ;;  %835 = vmatprep.mubr.bf16.mxu1 %v1819_v41  ;;  %v450_v40 = vld [vmem:[#allocation2 + $0xd8] sm:$0xff] }
  0x64   : > { %796 = vmatmul.mubr.bf16.gmra.mrb[8].mxu0 %v1818_v42  ;;  %836 = vmatmul.mubr.bf16.gmra.mrb[8].mxu1 %v1821_v43 }
  0x65   : > { %805 = vmatprep.mubr.bf16.mxu0 %v1822_v44  ;;  %845 = vmatprep.mubr.bf16.mxu1 %v1825_v45 }
  0x6c   : > { %806 = vmatmul.mubr.bf16.gmra.mrb[12].mxu0 %v1824_v46  ;;  %846 = vmatmul.mubr.bf16.gmra.mrb[12].mxu1 %v1827_v47 }
 0x127   : > { %v777_v51 = vpop.f32.mrb[0].mxu0  ;;  %v817_v52 = vpop.f32.mrb[0].mxu1 }
 0x128   : > { %v779_v53 = vpop.f32.mrb[1].mxu0  ;;  %v819_v54 = vpop.f32.mrb[1].mxu1  ;;  %v1634_v61 = vpack.c.bf16 %v777_v51, %v777_v51  ;;  %v1642_v62 = vpack.c.bf16 %v817_v52, %v817_v52 }
 0x129   : > { %v857_v57 = vadd.f32 %v779_v53, %v424_v49  ;;  %v873_v58 = vadd.f32 %v819_v54, %v440_v50  ;;  %v781_v59 = vpop.f32.mrb[2].mxu0  ;;  %v821_v60 = vpop.f32.mrb[2].mxu1 }
 0x12a   : > { %v783_v63 = vpop.f32.mrb[3].mxu0  ;;  %v823_v0 = vpop.f32.mrb[3].mxu1  ;;  %1005 = vst.msk [vmem:[%s2012_s10] sm:$0xf] %vm1004_vm1, %v1634_v61  ;;  %1013 = vst.msk [vmem:[%s2012_s10 + $0x20] sm:$0xf] %vm1004_vm1, %v1642_v62  ;;  %v1635_v3 = vpack.c.bf16 %v781_v59, %v781_v59  ;;  %v1643_v4 = vpack.c.bf16 %v821_v60, %v821_v60  ;;  %1085 = vrot.lane.b32.xlu0 %v1634_v61, %s1869_s11 }
 0x12b   : > { %890 = vst.msk [vmem:[#allocation2 + $0x8] sm:$0xff] %vm391_vm0, %v857_v57  ;;  %906 = vst.msk [vmem:[#allocation2 + $0x88] sm:$0xff] %vm391_vm0, %v873_v58  ;;  %v859_v1 = vadd.f32 %v783_v63, %v426_v55  ;;  %v875_v2 = vadd.f32 %v823_v0, %v442_v56  ;;  %v436_v61 = vld [vmem:[#allocation2 + $0x68] sm:$0xff] }
 0x12c   : > { %1006 = vst.msk [vmem:[%s2012_s10 + $0x4] sm:$0xf] %vm1004_vm1, %v1635_v3  ;;  %1014 = vst.msk [vmem:[%s2012_s10 + $0x24] sm:$0xf] %vm1004_vm1, %v1643_v4  ;;  %1103 = vrot.lane.b32.xlu1 %v1643_v4, %s1869_s11  ;;  %v454_v4 = vld [vmem:[#allocation2 + $0xf8] sm:$0xff] }
 0x12d   : > { %892 = vst.msk [vmem:[#allocation2 + $0x18] sm:$0xff] %vm391_vm0, %v859_v1  ;;  %908 = vst.msk [vmem:[#allocation2 + $0x98] sm:$0xff] %vm391_vm0, %v875_v2  ;;  %v438_v2 = vld [vmem:[#allocation2 + $0x78] sm:$0xff] }
 0x12e   : > { %1101 = vrot.lane.b32.xlu0 %v1642_v62, %s1869_s11  ;;  %v452_v62 = vld [vmem:[#allocation2 + $0xe8] sm:$0xff] }
 0x12f   : > { %v787_v7 = vpop.f32.mrb[4].mxu0  ;;  %v827_v8 = vpop.f32.mrb[4].mxu1 }
 0x130   : > { %v789_v9 = vpop.f32.mrb[5].mxu0  ;;  %v829_v11 = vpop.f32.mrb[5].mxu1  ;;  %v1636_v19 = vpack.c.bf16 %v787_v7, %v787_v7  ;;  %v1644_v21 = vpack.c.bf16 %v827_v8, %v827_v8 }
 0x131   : > { %v861_v13 = vadd.f32 %v789_v9, %v428_v5  ;;  %v791_v14 = vpop.f32.mrb[6].mxu0  ;;  %v877_v15 = vadd.f32 %v829_v11, %v444_v6  ;;  %v831_v16 = vpop.f32.mrb[6].mxu1 }
 0x132   : > { %v1149_v17 = vld [vmem:[#allocation2 + $0x8] sm:$0xff]  ;;  %v793_v20 = vpop.f32.mrb[7].mxu0  ;;  %v833_v22 = vpop.f32.mrb[7].mxu1  ;;  %1007 = vst.msk [vmem:[%s2012_s10 + $0x8] sm:$0xf] %vm1004_vm1, %v1636_v19  ;;  %v1637_v29 = vpack.c.bf16 %v791_v14, %v791_v14  ;;  %v1645_v30 = vpack.c.bf16 %v831_v16, %v831_v16  ;;  %1087 = vrot.lane.b32.xlu0 %v1635_v3, %s1869_s11  ;;  %1089 = vrot.lane.b32.xlu1 %v1636_v19, %s1869_s11 }
 0x133   : > { %v1157_v18 = vld [vmem:[#allocation2 + $0x88] sm:$0xff]  ;;  %v1666_v23 = vpack.c.bf16 %v1149_v17, %v1149_v17  ;;  %894 = vst.msk [vmem:[#allocation2 + $0x28] sm:$0xff] %vm391_vm0, %v861_v13  ;;  %v863_v25 = vadd.f32 %v793_v20, %v430_v10  ;;  %910 = vst.msk [vmem:[#allocation2 + $0xa8] sm:$0xff] %vm391_vm0, %v877_v15  ;;  %v879_v26 = vadd.f32 %v833_v22, %v446_v12 }
 0x134   : > { %v1674_v24 = vpack.c.bf16 %v1157_v18, %v1157_v18  ;;  %v1150_v27 = vld [vmem:[#allocation2 + $0x18] sm:$0xff]  ;;  %1015 = vst.msk [vmem:[%s2012_s10 + $0x28] sm:$0xf] %vm1004_vm1, %v1644_v21  ;;  %1008 = vst.msk [vmem:[%s2012_s10 + $0xc] sm:$0xf] %vm1004_vm1, %v1637_v29 }
 0x135   : > { %v1158_v28 = vld [vmem:[#allocation2 + $0x98] sm:$0xff]  ;;  %1229 = vst.msk [vmem:[%s2033_s14] sm:$0xf] %vm1004_vm1, %v1666_v23  ;;  %v1667_v31 = vpack.c.bf16 %v1150_v27, %v1150_v27  ;;  %1016 = vst.msk [vmem:[%s2012_s10 + $0x2c] sm:$0xf] %vm1004_vm1, %v1645_v30 }
 0x136   : > { %1237 = vst.msk [vmem:[%s2033_s14 + $0x20] sm:$0xf] %vm1004_vm1, %v1674_v24  ;;  %v1675_v32 = vpack.c.bf16 %v1158_v28, %v1158_v28  ;;  %1091 = vrot.lane.b32.xlu1 %v1637_v29, %s1869_s11  ;;  %1105 = vrot.lane.b32.xlu0 %v1644_v21, %s1869_s11 }
 0x137   : > { %896 = vst.msk [vmem:[#allocation2 + $0x38] sm:$0xff] %vm391_vm0, %v863_v25  ;;  %912 = vst.msk [vmem:[#allocation2 + $0xb8] sm:$0xff] %vm391_vm0, %v879_v26  ;;  %v797_v35 = vpop.f32.mrb[8].mxu0  ;;  %v837_v36 = vpop.f32.mrb[8].mxu1 }
 0x138   : > { %1230 = vst.msk [vmem:[%s2033_s14 + $0x4] sm:$0xf] %vm1004_vm1, %v1667_v31  ;;  %1238 = vst.msk [vmem:[%s2033_s14 + $0x24] sm:$0xf] %vm1004_vm1, %v1675_v32  ;;  %v799_v37 = vpop.f32.mrb[9].mxu0  ;;  %v839_v39 = vpop.f32.mrb[9].mxu1  ;;  %v1638_v47 = vpack.c.bf16 %v797_v35, %v797_v35  ;;  %v1646_v49 = vpack.c.bf16 %v837_v36, %v837_v36 }
 0x139   : > { %v865_v41 = vadd.f32 %v799_v37, %v432_v33  ;;  %v801_v42 = vpop.f32.mrb[10].mxu0  ;;  %v881_v43 = vadd.f32 %v839_v39, %v448_v34  ;;  %v841_v44 = vpop.f32.mrb[10].mxu1 }
 0x13a   : > { %v1151_v45 = vld [vmem:[#allocation2 + $0x28] sm:$0xff]  ;;  %v803_v48 = vpop.f32.mrb[11].mxu0  ;;  %v843_v50 = vpop.f32.mrb[11].mxu1  ;;  %1009 = vst.msk [vmem:[%s2012_s10 + $0x10] sm:$0xf] %vm1004_vm1, %v1638_v47  ;;  %v1639_v57 = vpack.c.bf16 %v801_v42, %v801_v42  ;;  %v1647_v58 = vpack.c.bf16 %v841_v44, %v841_v44  ;;  %1107 = vrot.lane.b32.xlu1 %v1645_v30, %s1869_s11  ;;  %1093 = vrot.lane.b32.xlu0 %v1638_v47, %s1869_s11 }
 0x13b   : > { %v1159_v46 = vld [vmem:[#allocation2 + $0xa8] sm:$0xff]  ;;  %v1668_v51 = vpack.c.bf16 %v1151_v45, %v1151_v45  ;;  %898 = vst.msk [vmem:[#allocation2 + $0x48] sm:$0xff] %vm391_vm0, %v865_v41  ;;  %v867_v53 = vadd.f32 %v803_v48, %v434_v38  ;;  %914 = vst.msk [vmem:[#allocation2 + $0xc8] sm:$0xff] %vm391_vm0, %v881_v43  ;;  %v883_v54 = vadd.f32 %v843_v50, %v450_v40 }
 0x13c   : > { %v1676_v52 = vpack.c.bf16 %v1159_v46, %v1159_v46  ;;  %1017 = vst.msk [vmem:[%s2012_s10 + $0x30] sm:$0xf] %vm1004_vm1, %v1646_v49  ;;  %1010 = vst.msk [vmem:[%s2012_s10 + $0x14] sm:$0xf] %vm1004_vm1, %v1639_v57 }
 0x13d   : > { %1231 = vst.msk [vmem:[%s2033_s14 + $0x8] sm:$0xf] %vm1004_vm1, %v1668_v51  ;;  %1018 = vst.msk [vmem:[%s2012_s10 + $0x34] sm:$0xf] %vm1004_vm1, %v1647_v58 }
 0x13e   : > { %v1152_v55 = vld [vmem:[#allocation2 + $0x38] sm:$0xff]  ;;  %1239 = vst.msk [vmem:[%s2033_s14 + $0x28] sm:$0xf] %vm1004_vm1, %v1676_v52  ;;  %1095 = vrot.lane.b32.xlu1 %v1639_v57, %s1869_s11  ;;  %1109 = vrot.lane.b32.xlu0 %v1646_v49, %s1869_s11 }
 0x13f   : > { %v1160_v56 = vld [vmem:[#allocation2 + $0xb8] sm:$0xff]  ;;  %v1669_v59 = vpack.c.bf16 %v1152_v55, %v1152_v55  ;;  %900 = vst.msk [vmem:[#allocation2 + $0x58] sm:$0xff] %vm391_vm0, %v867_v53  ;;  %916 = vst.msk [vmem:[#allocation2 + $0xd8] sm:$0xff] %vm391_vm0, %v883_v54  ;;  %v807_v63 = vpop.f32.mrb[12].mxu0  ;;  %v847_v0 = vpop.f32.mrb[12].mxu1 }
 0x140   : > { %v1677_v60 = vpack.c.bf16 %v1160_v56, %v1160_v56  ;;  %v809_v1 = vpop.f32.mrb[13].mxu0  ;;  %v849_v3 = vpop.f32.mrb[13].mxu1  ;;  %v1640_v11 = vpack.c.bf16 %v807_v63, %v807_v63  ;;  %v1648_v12 = vpack.c.bf16 %v847_v0, %v847_v0 }
 0x141   : > { %1232 = vst.msk [vmem:[%s2033_s14 + $0xc] sm:$0xf] %vm1004_vm1, %v1669_v59  ;;  %v869_v5 = vadd.f32 %v809_v1, %v436_v61  ;;  %v811_v6 = vpop.f32.mrb[14].mxu0  ;;  %v885_v7 = vadd.f32 %v849_v3, %v452_v62  ;;  %v851_v8 = vpop.f32.mrb[14].mxu1 }
 0x142   : > { %1240 = vst.msk [vmem:[%s2033_s14 + $0x2c] sm:$0xf] %vm1004_vm1, %v1677_v60  ;;  %v1153_v9 = vld [vmem:[#allocation2 + $0x48] sm:$0xff]  ;;  %v813_v13 = vpop.f32.mrb[15].mxu0  ;;  %v853_v14 = vpop.f32.mrb[15].mxu1  ;;  %v1641_v21 = vpack.c.bf16 %v811_v6, %v811_v6  ;;  %v1649_v22 = vpack.c.bf16 %v851_v8, %v851_v8  ;;  %1111 = vrot.lane.b32.xlu1 %v1647_v58, %s1869_s11  ;;  %1097 = vrot.lane.b32.xlu0 %v1640_v11, %s1869_s11 }
 0x143   : > { %v1161_v10 = vld [vmem:[#allocation2 + $0xc8] sm:$0xff]  ;;  %v1670_v15 = vpack.c.bf16 %v1153_v9, %v1153_v9  ;;  %902 = vst.msk [vmem:[#allocation2 + $0x68] sm:$0xff] %vm391_vm0, %v869_v5  ;;  %v871_v17 = vadd.f32 %v813_v13, %v438_v2  ;;  %918 = vst.msk [vmem:[#allocation2 + $0xe8] sm:$0xff] %vm391_vm0, %v885_v7  ;;  %v887_v18 = vadd.f32 %v853_v14, %v454_v4 }
 0x144   : > { %v1678_v16 = vpack.c.bf16 %v1161_v10, %v1161_v10  ;;  %1011 = vst.msk [vmem:[%s2012_s10 + $0x18] sm:$0xf] %vm1004_vm1, %v1640_v11  ;;  %1019 = vst.msk [vmem:[%s2012_s10 + $0x38] sm:$0xf] %vm1004_vm1, %v1648_v12 }
 0x145   : > { %1233 = vst.msk [vmem:[%s2033_s14 + $0x10] sm:$0xf] %vm1004_vm1, %v1670_v15  ;;  %1012 = vst.msk [vmem:[%s2012_s10 + $0x1c] sm:$0xf] %vm1004_vm1, %v1641_v21 }
 0x146   : > { %v1154_v19 = vld [vmem:[#allocation2 + $0x58] sm:$0xff]  ;;  %1241 = vst.msk [vmem:[%s2033_s14 + $0x30] sm:$0xf] %vm1004_vm1, %v1678_v16  ;;  %1020 = vst.msk [vmem:[%s2012_s10 + $0x3c] sm:$0xf] %vm1004_vm1, %v1649_v22  ;;  %1099 = vrot.lane.b32.xlu1 %v1641_v21, %s1869_s11  ;;  %1113 = vrot.lane.b32.xlu0 %v1648_v12, %s1869_s11 }
 0x147   : > { %v1162_v20 = vld [vmem:[#allocation2 + $0xd8] sm:$0xff]  ;;  %v1671_v23 = vpack.c.bf16 %v1154_v19, %v1154_v19  ;;  %904 = vst.msk [vmem:[#allocation2 + $0x78] sm:$0xff] %vm391_vm0, %v871_v17  ;;  %920 = vst.msk [vmem:[#allocation2 + $0xf8] sm:$0xff] %vm391_vm0, %v887_v18 }
 0x148   : > { %v1679_v24 = vpack.c.bf16 %v1162_v20, %v1162_v20 }
 0x149   : > { %1234 = vst.msk [vmem:[%s2033_s14 + $0x14] sm:$0xf] %vm1004_vm1, %v1671_v23 }
 0x14a   : > { %1242 = vst.msk [vmem:[%s2033_s14 + $0x34] sm:$0xf] %vm1004_vm1, %v1679_v24  ;;  %v1155_v25 = vld [vmem:[#allocation2 + $0x68] sm:$0xff]  ;;  %1115 = vrot.lane.b32.xlu1 %v1649_v22, %s1869_s11 }
 0x14b   : > { %v1163_v26 = vld [vmem:[#allocation2 + $0xe8] sm:$0xff]  ;;  %v1672_v27 = vpack.c.bf16 %v1155_v25, %v1155_v25 }
 0x14c   : > { %v1680_v28 = vpack.c.bf16 %v1163_v26, %v1163_v26 }
 0x14d   : > { %1235 = vst.msk [vmem:[%s2033_s14 + $0x18] sm:$0xf] %vm1004_vm1, %v1672_v27 }
 0x14e   : > { %v1156_v29 = vld [vmem:[#allocation2 + $0x78] sm:$0xff]  ;;  %1243 = vst.msk [vmem:[%s2033_s14 + $0x38] sm:$0xf] %vm1004_vm1, %v1680_v28 }
 0x14f   : > { %v1164_v30 = vld [vmem:[#allocation2 + $0xf8] sm:$0xff]  ;;  %v1673_v31 = vpack.c.bf16 %v1156_v29, %v1156_v29 }
 0x150   : > { %v1681_v32 = vpack.c.bf16 %v1164_v30, %v1164_v30 }
 0x151   : > { %1236 = vst.msk [vmem:[%s2033_s14 + $0x1c] sm:$0xf] %vm1004_vm1, %v1673_v31 }
 0x152   : > { %1244 = vst.msk [vmem:[%s2033_s14 + $0x3c] sm:$0xf] %vm1004_vm1, %v1681_v32 }
 0x19c   : > { %v1086_v33 = vpop.permute.xlu0 %1085 }
 0x19d   : > { %1133 = vst.msk [vmem:[%s2120_s22] sm:$0xf] %vm1004_vm1, %v1086_v33 }
 0x19e   : > { %v1104_v34 = vpop.permute.xlu1 %1103 }
 0x19f   : > { %1142 = vst.msk [vmem:[%s2120_s22 + $0x24] sm:$0xf] %vm1004_vm1, %v1104_v34 }
 0x1a0   : > { %v1102_v35 = vpop.permute.xlu0 %1101 }
 0x1a1   : > { %1141 = vst.msk [vmem:[%s2120_s22 + $0x20] sm:$0xf] %vm1004_vm1, %v1102_v35 }
 0x1a4   : > { %v1088_v36 = vpop.permute.xlu0 %1087  ;;  %v1090_v37 = vpop.permute.xlu1 %1089 }
 0x1a5   : > { %1134 = vst.msk [vmem:[%s2120_s22 + $0x4] sm:$0xf] %vm1004_vm1, %v1088_v36  ;;  %1135 = vst.msk [vmem:[%s2120_s22 + $0x8] sm:$0xf] %vm1004_vm1, %v1090_v37 }
 0x1a8   : > { %v1092_v38 = vpop.permute.xlu1 %1091  ;;  %v1106_v39 = vpop.permute.xlu0 %1105 }
 0x1a9   : > { %1136 = vst.msk [vmem:[%s2120_s22 + $0xc] sm:$0xf] %vm1004_vm1, %v1092_v38  ;;  %1143 = vst.msk [vmem:[%s2120_s22 + $0x28] sm:$0xf] %vm1004_vm1, %v1106_v39 }
 0x1ac   : > { %v1108_v40 = vpop.permute.xlu1 %1107  ;;  %v1094_v41 = vpop.permute.xlu0 %1093 }
 0x1ad   : > { %1144 = vst.msk [vmem:[%s2120_s22 + $0x2c] sm:$0xf] %vm1004_vm1, %v1108_v40  ;;  %1137 = vst.msk [vmem:[%s2120_s22 + $0x10] sm:$0xf] %vm1004_vm1, %v1094_v41 }
 0x1b0   : > { %v1096_v42 = vpop.permute.xlu1 %1095  ;;  %v1110_v43 = vpop.permute.xlu0 %1109 }
 0x1b1   : > { %1138 = vst.msk [vmem:[%s2120_s22 + $0x14] sm:$0xf] %vm1004_vm1, %v1096_v42  ;;  %1145 = vst.msk [vmem:[%s2120_s22 + $0x30] sm:$0xf] %vm1004_vm1, %v1110_v43 }
 0x1b4   : > { %v1112_v44 = vpop.permute.xlu1 %1111  ;;  %v1098_v45 = vpop.permute.xlu0 %1097 }
 0x1b5   : > { %1146 = vst.msk [vmem:[%s2120_s22 + $0x34] sm:$0xf] %vm1004_vm1, %v1112_v44  ;;  %1139 = vst.msk [vmem:[%s2120_s22 + $0x18] sm:$0xf] %vm1004_vm1, %v1098_v45 }
 0x1b8   : > { %v1100_v46 = vpop.permute.xlu1 %1099  ;;  %v1114_v47 = vpop.permute.xlu0 %1113 }
 0x1b9   : > { %1140 = vst.msk [vmem:[%s2120_s22 + $0x1c] sm:$0xf] %vm1004_vm1, %v1100_v46  ;;  %1147 = vst.msk [vmem:[%s2120_s22 + $0x38] sm:$0xf] %vm1004_vm1, %v1114_v47 }
 0x1bc   : > { %v1116_v48 = vpop.permute.xlu1 %1115 }
 0x1bd   : > { %1148 = vst.msk [vmem:[%s2120_s22 + $0x3c] sm:$0xf] %vm1004_vm1, %v1116_v48 }
 0x1be PF: > { %s15_s19 = sadd.s32 1, %s1866_s19   ;;  %s2174_s15 = smov %s1858_s17 }
 0x1bf   : > { %p12_p7 = scmp.ge.s32.totalorder %s15_s19, 10   ;;  %s2175_s16 = smov %s1862_s18 }
 0x1c0   : > { %s2176_s17 = smov %s2179_s20  ;;  %s2177_s18 = smov %s2183_s21 }
 0x1c1   :  { %14 = sbr.rel (!%p12_p7) target bundleno = 3 (0x3), region = 93 }

</bundles_post_ra>
